<compile_context>
chip_gen: v5e
topology: v5e:2x2
jax: 0.10.0
libtpu: 0.0.40
codegen_flags: <defaults>
</compile_context>

<pallas_src>
import functools

import jax
import jax.numpy as jnp
import numpy as np
from jax import lax
from jax.experimental import pallas as pl
from jax.experimental.pallas import tpu as pltpu


def _round_up(x: int, m: int) -> int:
    return ((x + m - 1) // m) * m


def _encoder_image_kernel(x_ref, w_ref, b_ref, o_ref, *, no_imgnorm: bool):
    """One row-tile: emb = x @ W_t + b, then (optionally) L2-normalize rows.

    x_ref: (tm, img_dim)    VMEM  (compute dtype, e.g. bf16)
    w_ref: (img_dim, embed) VMEM  (compute dtype; grid-invariant, resident)
    b_ref: (1, embed)       VMEM  (f32)
    o_ref: (tm, embed)      VMEM
    """
    # MXU matmul in operand storage dtype with f32 accumulation.
    emb = jnp.dot(x_ref[...], w_ref[...], preferred_element_type=jnp.float32)
    emb = emb + b_ref[...]
    if not no_imgnorm:
        # l2norm: x * rsqrt(sum(x^2) + (1e-8)^2) -- one EUP push; matches the
        # reference's sqrt(.)+1e-8 divide away from exactly-zero rows.
        ssq = jnp.sum(emb * emb, axis=-1, keepdims=True)
        emb = emb * lax.rsqrt(ssq + 1e-16)
    o_ref[...] = emb.astype(o_ref.dtype)


def encoder_image(images, weight_t, bias, *, no_imgnorm: bool = False,
                  tm: int | None = None, compute_dtype=jnp.bfloat16,
                  out_dtype=None):
    """images: (B, R, img_dim); weight_t: (img_dim, embed) [pre-transposed];
    bias: (embed,).  Returns (B, R, embed) in `out_dtype` (default images.dtype).
    Set out_dtype=jnp.bfloat16 to halve the output writeback when downstream
    tolerates it."""
    B, R, D = images.shape
    D_w, E = weight_t.shape
    assert D_w == D, (D_w, D)
    M = B * R
    out_dtype = images.dtype if out_dtype is None else out_dtype
    cbytes = jnp.dtype(compute_dtype).itemsize
    obytes = jnp.dtype(out_dtype).itemsize

    # ---- row-tile selection -------------------------------------------------
    # Large tiles amortize the ~0.35us per-grid-step overhead; balanced tiles
    # avoid a nearly-empty trailing tile; >=2 tiles when M <= tm so v7x's
    # second TensorCore gets work on the "parallel" axis.
    if tm is None:
        tm = 1024 if cbytes <= 2 else 512
    tm = max(8, _round_up(tm, 8))
    if M <= 8:
        tm_eff = 8
    elif M <= tm:
        tm_eff = _round_up(pl.cdiv(M, 2), 8)
    else:
        tm_eff = _round_up(pl.cdiv(M, pl.cdiv(M, tm)), 8)
    grid_m = pl.cdiv(M, tm_eff)

    # ---- operands (no padding, no transpose) --------------------------------
    x = images.reshape(M, D).astype(compute_dtype)
    w = weight_t.astype(compute_dtype)
    b2 = bias.reshape(1, E).astype(jnp.float32)

    # ---- explicit VMEM budget (v5e scoped default is only 16 MiB) -----------
    vmem_needed = (2 * D * E * cbytes            # resident weight (<=2 buffers)
                   + 2 * tm_eff * D * cbytes     # double-buffered x tiles
                   + 2 * tm_eff * E * obytes     # double-buffered out tiles
                   + 2 * E * 4)                  # bias
    vmem_limit = int(min(max(2 * vmem_needed, 32 << 20), 100 << 20))

    kernel = functools.partial(_encoder_image_kernel, no_imgnorm=no_imgnorm)

    def build(const_spec_kwargs):
        return pl.pallas_call(
            kernel,
            out_shape=jax.ShapeDtypeStruct((M, E), out_dtype),
            grid_spec=pltpu.PrefetchScalarGridSpec(
                num_scalar_prefetch=0,
                grid=(grid_m,),
                in_specs=[
                    pl.BlockSpec((tm_eff, D), lambda i: (i, 0)),       # row tile
                    pl.BlockSpec((D, E), lambda i: (0, 0),             # weight
                                 **const_spec_kwargs),
                    pl.BlockSpec((1, E), lambda i: (0, 0),              # bias
                                 **const_spec_kwargs),
                ],
                out_specs=pl.BlockSpec((tm_eff, E), lambda i: (i, 0)),
            ),
            compiler_params=pltpu.CompilerParams(
                dimension_semantics=("parallel",),
                vmem_limit_bytes=vmem_limit,
            ),
        )

    try:
        # Single-buffer the grid-invariant weight/bias (they never re-DMA);
        # reclaims a full weight footprint of VMEM.
        out = build(dict(pipeline_mode=pl.Buffered(1)))(x, w, b2)
    except Exception:
        # Fallback for Pallas versions without single-buffered pipeline_mode.
        out = build({})(x, w, b2)

    return out.reshape(B, R, E)


def init_encoder_image_params(key, img_dim, embed_size):
    """Xavier-uniform init matching EncoderImage.init_weights (bias = 0).
    Returns the weight PRE-TRANSPOSED as (img_dim, embed) so the forward pass
    never pays a D*E transpose: fc(x) = x @ weight_t + bias."""
    r = np.sqrt(6.0) / np.sqrt(img_dim + embed_size)
    weight_t = jax.random.uniform(
        key, (img_dim, embed_size), dtype=jnp.float32, minval=-r, maxval=r
    )
    bias = jnp.zeros((embed_size,), dtype=jnp.float32)
    return weight_t, bias


def _reference(images, weight_t, bias, no_imgnorm):
    B, R, D = images.shape
    E = weight_t.shape[1]
    emb = (images.reshape(B * R, D).astype(jnp.float32)
           @ weight_t.astype(jnp.float32) + bias)
    if not no_imgnorm:
        emb = emb / (jnp.sqrt(jnp.sum(emb * emb, axis=-1, keepdims=True)) + 1e-8)
    return emb.reshape(B, R, E)


if __name__ == "__main__":
    key = jax.random.PRNGKey(0)
    k_img, k_w, k_img2 = jax.random.split(key, 3)

    # Config 1: module-like shapes at small dims (batch=2, 36 regions).
    B, R, IMG_DIM, EMBED = 2, 36, 256, 128
    images = jax.random.normal(k_img, (B, R, IMG_DIM), dtype=jnp.float32)
    weight_t, bias = init_encoder_image_params(k_w, IMG_DIM, EMBED)
    ref = _reference(images, weight_t, bias, no_imgnorm=False)

    # Default bf16 MXU path.
    out_bf16 = jax.block_until_ready(
        encoder_image(images, weight_t, bias, no_imgnorm=False))
    assert out_bf16.shape == (B, R, EMBED)
    np.testing.assert_allclose(np.asarray(out_bf16), np.asarray(ref),
                               rtol=2e-2, atol=2e-2)

    # f32 compute path, tighter tolerance.
    out_f32 = jax.block_until_ready(
        encoder_image(images, weight_t, bias, no_imgnorm=False,
                      compute_dtype=jnp.float32))
    np.testing.assert_allclose(np.asarray(out_f32), np.asarray(ref),
                               rtol=5e-3, atol=5e-3)

    # Config 2: awkward row count (ragged trailing block, no pad/slice copies)
    # + no normalization.
    B2, R2 = 3, 7
    images2 = jax.random.normal(k_img2, (B2, R2, IMG_DIM), dtype=jnp.float32)
    out2 = jax.block_until_ready(
        encoder_image(images2, weight_t, bias, no_imgnorm=True,
                      compute_dtype=jnp.float32))
    ref2 = _reference(images2, weight_t, bias, no_imgnorm=True)
    assert out2.shape == (B2, R2, EMBED)
    np.testing.assert_allclose(np.asarray(out2), np.asarray(ref2),
                               rtol=5e-3, atol=5e-3)

    print("KERNEL_OK")
</pallas_src>

<mosaic_0001>
module attributes {stable_mosaic.version = 11 : i64} {
  func.func @_encoder_image_kernel(%arg0: i32, %arg1: memref<40x256xbf16, #tpu.memory_space<vmem>>, %arg2: memref<256x128xbf16, #tpu.memory_space<vmem>>, %arg3: memref<1x128xf32, #tpu.memory_space<vmem>>, %arg4: memref<40x128xf32, #tpu.memory_space<vmem>>) attributes {dimension_semantics = [#tpu.dimension_semantics<parallel>], iteration_bounds = array<i64: 2>, scalar_prefetch = 0 : i64, scratch_operands = 0 : i64, tpu.core_type = #tpu.core_type<tc>, window_params = [{transform_indices = @transform_0, window_bounds = array<i64: 40, 256>}, {pipeline_mode = #tpu.pipeline_mode<synchronous>, transform_indices = @transform_1, window_bounds = array<i64: 256, 128>}, {pipeline_mode = #tpu.pipeline_mode<synchronous>, transform_indices = @transform_2, window_bounds = array<i64: 1, 128>}, {transform_indices = @transform_3, window_bounds = array<i64: 40, 128>}]} {
    %c0 = arith.constant 0 : index
    %c0_0 = arith.constant 0 : index
    %0 = vector.load %arg1[%c0, %c0_0] : memref<40x256xbf16, #tpu.memory_space<vmem>>, vector<40x256xbf16>
    %c0_1 = arith.constant 0 : index
    %c0_2 = arith.constant 0 : index
    %1 = vector.load %arg2[%c0_1, %c0_2] : memref<256x128xbf16, #tpu.memory_space<vmem>>, vector<256x128xbf16>
    %cst = arith.constant dense<0.000000e+00> : vector<40x128xf32>
    %2 = tpu.matmul %0, %1, %cst {dimension_numbers = #tpu.dot_dimension_numbers<[1], [0], [0], [1], [0, 0, 1, 1], [], []>} : vector<40x256xbf16>, vector<256x128xbf16>, vector<40x128xf32> -> vector<40x128xf32>
    %c0_3 = arith.constant 0 : index
    %c0_4 = arith.constant 0 : index
    %3 = vector.load %arg3[%c0_3, %c0_4] : memref<1x128xf32, #tpu.memory_space<vmem>>, vector<1x128xf32>
    %4 = vector.broadcast %3 : vector<1x128xf32> to vector<40x128xf32>
    %5 = arith.addf %2, %4 : vector<40x128xf32>
    %6 = arith.mulf %5, %5 : vector<40x128xf32>
    %cst_5 = arith.constant dense<0.000000e+00> : vector<40xf32>
    %7 = vector.multi_reduction <add>, %6, %cst_5 [1] : vector<40x128xf32> to vector<40xf32>
    %8 = vector.shape_cast %7 : vector<40xf32> to vector<40x1xf32>
    %cst_6 = arith.constant 1.000000e-16 : f32
    %9 = vector.broadcast %cst_6 : f32 to vector<40x1xf32>
    %10 = arith.addf %8, %9 : vector<40x1xf32>
    %11 = math.rsqrt %10 : vector<40x1xf32>
    %12 = vector.broadcast %11 : vector<40x1xf32> to vector<40x128xf32>
    %13 = arith.mulf %5, %12 : vector<40x128xf32>
    %c0_7 = arith.constant 0 : index
    %c0_8 = arith.constant 0 : index
    %14 = vector.load %arg4[%c0_7, %c0_8] : memref<40x128xf32, #tpu.memory_space<vmem>>, vector<40x128xf32>
    tpu.vector_store %arg4[%c0_7, %c0_8], %13 {strides = array<i32>} : memref<40x128xf32, #tpu.memory_space<vmem>>, vector<40x128xf32>,
    return
  }
  func.func @transform_0(%arg0: i32) -> (i32, i32) {
    %c0_i32 = arith.constant 0 : i32
    %c0_i32_0 = arith.constant 0 : i32
    return %arg0, %c0_i32 : i32, i32
  }
  func.func @transform_1(%arg0: i32) -> (i32, i32) {
    %c0_i32 = arith.constant 0 : i32
    %c0_i32_0 = arith.constant 0 : i32
    %c0_i32_1 = arith.constant 0 : i32
    return %c0_i32, %c0_i32_0 : i32, i32
  }
  func.func @transform_2(%arg0: i32) -> (i32, i32) {
    %c0_i32 = arith.constant 0 : i32
    %c0_i32_0 = arith.constant 0 : i32
    %c0_i32_1 = arith.constant 0 : i32
    return %c0_i32, %c0_i32_0 : i32, i32
  }
  func.func @transform_3(%arg0: i32) -> (i32, i32) {
    %c0_i32 = arith.constant 0 : i32
    %c0_i32_0 = arith.constant 0 : i32
    return %arg0, %c0_i32 : i32, i32
  }
}

module attributes {stable_mosaic.version = 11 : i64} {
  func.func @_encoder_image_kernel(%arg0: i32, %arg1: memref<40x256xbf16, #tpu.memory_space<vmem>>, %arg2: memref<256x128xbf16, #tpu.memory_space<vmem>>, %arg3: memref<1x128xf32, #tpu.memory_space<vmem>>, %arg4: memref<40x128xf32, #tpu.memory_space<vmem>>) attributes {dimension_semantics = [#tpu.dimension_semantics<parallel>], iteration_bounds = array<i64: 2>, scalar_prefetch = 0 : i64, scratch_operands = 0 : i64, tpu.core_type = #tpu.core_type<tc>, window_params = [{transform_indices = @transform_0, window_bounds = array<i64: 40, 256>}, {pipeline_mode = #tpu.pipeline_mode<synchronous>, transform_indices = @transform_1, window_bounds = array<i64: 256, 128>}, {pipeline_mode = #tpu.pipeline_mode<synchronous>, transform_indices = @transform_2, window_bounds = array<i64: 1, 128>}, {transform_indices = @transform_3, window_bounds = array<i64: 40, 128>}]} {
    %c0 = arith.constant 0 : index
    %c0_0 = arith.constant 0 : index
    %0 = vector.load %arg1[%c0, %c0_0] : memref<40x256xbf16, #tpu.memory_space<vmem>>, vector<40x256xbf16>
    %c0_1 = arith.constant 0 : index
    %c0_2 = arith.constant 0 : index
    %1 = vector.load %arg2[%c0_1, %c0_2] : memref<256x128xbf16, #tpu.memory_space<vmem>>, vector<256x128xbf16>
    %cst = arith.constant dense<0.000000e+00> : vector<40x128xf32>
    %2 = tpu.matmul %0, %1, %cst {dimension_numbers = #tpu.dot_dimension_numbers<[1], [0], [0], [1], [0, 0, 1, 1], [], []>} : vector<40x256xbf16>, vector<256x128xbf16>, vector<40x128xf32> -> vector<40x128xf32>
    %c0_3 = arith.constant 0 : index
    %c0_4 = arith.constant 0 : index
    %3 = vector.load %arg3[%c0_3, %c0_4] : memref<1x128xf32, #tpu.memory_space<vmem>>, vector<1x128xf32>
    %4 = vector.broadcast %3 : vector<1x128xf32> to vector<40x128xf32>
    %5 = arith.addf %2, %4 : vector<40x128xf32>
    %6 = arith.mulf %5, %5 : vector<40x128xf32>
    %cst_5 = arith.constant dense<0.000000e+00> : vector<40xf32>
    %7 = vector.multi_reduction <add>, %6, %cst_5 [1] : vector<40x128xf32> to vector<40xf32>
    %8 = vector.shape_cast %7 : vector<40xf32> to vector<40x1xf32>
    %cst_6 = arith.constant 1.000000e-16 : f32
    %9 = vector.broadcast %cst_6 : f32 to vector<40x1xf32>
    %10 = arith.addf %8, %9 : vector<40x1xf32>
    %11 = math.rsqrt %10 : vector<40x1xf32>
    %12 = vector.broadcast %11 : vector<40x1xf32> to vector<40x128xf32>
    %13 = arith.mulf %5, %12 : vector<40x128xf32>
    %c0_7 = arith.constant 0 : index
    %c0_8 = arith.constant 0 : index
    %14 = vector.load %arg4[%c0_7, %c0_8] : memref<40x128xf32, #tpu.memory_space<vmem>>, vector<40x128xf32>
    tpu.vector_store %arg4[%c0_7, %c0_8], %13 {strides = array<i32>} : memref<40x128xf32, #tpu.memory_space<vmem>>, vector<40x128xf32>,
    return
  }
  func.func @transform_0(%arg0: i32) -> (i32, i32) {
    %c0_i32 = arith.constant 0 : i32
    %c0_i32_0 = arith.constant 0 : i32
    return %arg0, %c0_i32 : i32, i32
  }
  func.func @transform_1(%arg0: i32) -> (i32, i32) {
    %c0_i32 = arith.constant 0 : i32
    %c0_i32_0 = arith.constant 0 : i32
    %c0_i32_1 = arith.constant 0 : i32
    return %c0_i32, %c0_i32_0 : i32, i32
  }
  func.func @transform_2(%arg0: i32) -> (i32, i32) {
    %c0_i32 = arith.constant 0 : i32
    %c0_i32_0 = arith.constant 0 : i32
    %c0_i32_1 = arith.constant 0 : i32
    return %c0_i32, %c0_i32_0 : i32, i32
  }
  func.func @transform_3(%arg0: i32) -> (i32, i32) {
    %c0_i32 = arith.constant 0 : i32
    %c0_i32_0 = arith.constant 0 : i32
    return %arg0, %c0_i32 : i32, i32
  }
}

</mosaic_0001>

<bundles_post_ra>
// kernel: tpu_custom_call.1
= control target key start
LH: loop header
LB: loop body
LE: loop exit
PB: predicated region body
PF: predicated region fallthrough
CT: control target
= control target key end

     0   :  { %8 = vsyncpa [#allocation3], 0  ;;  %s1259_s0 = inlined_call_operand.hbm [shape: bf16[72,256], index: 0, kind: input, shape index: {}]   ;;  %s1260_s1 = inlined_call_operand.hbm [shape: bf16[256,128], index: 1, kind: input, shape index: {}]   ;;  %s1261_s2 = inlined_call_operand.vmem [shape: f32[1,128], index: 2, kind: input, shape index: {}]   ;;  %s1262_s3 = inlined_call_operand.hbm [shape: f32[72,128], index: 3, kind: output, shape index: {}]  }
   0x1   :  { %10 = vsyncpa [#allocation3 + $0x1], 0 }
   0x2   :  { %11 = vsyncpa [#allocation6], 0 }
   0x3   :  { %12 = vsyncpa [#allocation4], 0 }
   0x4   :  { %14 = vsyncpa [#allocation4 + $0x1], 0  ;;  %s1015_s12 = smov 0   ;;  %s1017_s13 = smov 0  }
   0x5   :  { %s1019_s14 = smov 0   ;;  %s1021_s15 = smov 0  }
   0x6 LB: > { %s1036_s16 = sadd.s32 4294967295, %s984_s15   ;;  %s624_s17 = sadd.s32 4294967294, %s984_s15   ;;  %s984_s15 = sphi %s1021_s15, %s1279_s15   ;;  %s980_s14 = sphi %s1019_s14, %s1278_s14   ;;  %s976_s13 = sphi %s1017_s13, %s1277_s13   ;;  %s972_s12 = sphi %s1015_s12, %s1276_s12  }
   0x7   : > { %s1040_s18 = sadd.s32 1, %s984_s15   ;;  %s27_s19 = sadd.s32 1, %s980_s14 }
   0x8   : > { %s24_s20 = ssub.s32 %s984_s15, %s1040_s18  ;;  %p34_p0 = scmp.ne.s32.totalorder %s980_s14, %s976_s13 }
   0x9   : > { %p25_p1 = scmp.eq.s32.totalorder %s24_s20, 0  ;;  %p35_p2 = scmp.eq.s32.totalorder %s984_s15, 0 }
   0xa   : > { %p40_p3 = scmp.ne.s32.totalorder %s976_s13, %s972_s12  ;;  %p1264_p4 = scmp.eq.s32.totalorder %s1036_s16, 0 }
   0xb   : > { %s1052_s21 = scalar_select %p25_p1, %s980_s14, %s27_s19  }
   0xc   : > { %p1054_p5 = por %p35_p2, %p34_p0  ;;  %p1060_p6 = por %p1264_p4, %p40_p3 }
   0xd   : > { %p106_p7 = scmp.eq.s32.totalorder %s1036_s16, 1  ;;  %p112_p8 = scmp.eq.s32.totalorder %s624_s17, 1 }
   0xe   : > { %p625_p9 = scmp.ge.s32.totalorder %s984_s15, 1  ;;  %p119_p10 = scmp.lt.s32.totalorder %s984_s15, 3 }
   0xf   : > { %p1067_p11 = por %p106_p7, %p34_p0  ;;  %p1071_p12 = por %p112_p8, %p40_p3 }
  0x10   : > { %p1075_p13 = pnand %p625_p9, %p119_p10  ;;  %s130_s29 = sshll.u32 %s1260_s1, 4  ;;  %s131_s29 = int_to_ptr.hbm [resolvable:$true] %s130_s29 }
  0x11   : > { %s1268_s25 = scalar_select %p1071_p12, 1, 0 }
  0x12   : > { %p773_p1 = pneg %p1075_p13  ;;  %s986_s30 = smov [#allocation5]  }
  0x13   : > { %s132_s4 = sshll.u32 %s986_s30, 4  ;;  %s987_s5 = smov 64   ;;  %s133_s4 = int_to_ptr.vmem [resolvable:$true] %s132_s4 }
  0x14   : > { %p774_p0 = pnand %p773_p1, %p1264_p4  ;;  %s988_s6 = smov 4  }
  0x15   : > { %p1263_p2 = scmp.ge.s32.totalorder %s984_s15, 2 }
  0x16   : > { %776 = dma.hbm_to_vmem [thread:$0]  (!%p774_p0), %s131_s29, 2048, %s133_s4, [#allocation6], %s987_s5, %s987_s5, %s988_s6  }
  0x17   : > { %145 = sbr.rel (%p1263_p2) target bundleno = 66 (0x42), region = 24 }
  0x1c   : > { %148 = sbr.rel (!%p1054_p5) target bundleno = 66 (0x42), region = 28  ;;  %s149_s7 = sand.u32 (%p1054_p5), 1, %s980_s14  }
  0x1d   : > { %s154_s8 = smul.u32 (%p1054_p5), 5, %s984_s15  ;;  %s1096_s20 = scalar_lea.sflag (%p1054_p5), [#allocation3], %s149_s7 }
  0x1e   : > { %s765_s9 = smul.u32 (%p1054_p5), 40, %s149_s7 }
  0x1f   : > { %s155_s10 = ssub.s32 (%p1054_p5), 9, %s154_s8 }
  0x20   : > { %p156_p3 = scmp.lt.s32.totalorder (%p1054_p5), %s155_s10, 5  ;;  %s153_s27 = scalar_lea.vmem (%p1054_p5), [#allocation2], %s765_s9 }
  0x22   : > { %s1281_s10 = smov (!%p156_p3, %s155_s10), 5 }
  0x23   : > { %s724_s11 = sshll.u32 %s1281_s10, 3 }
  0x24   : > { %s160_s17 = ssub.s32 40, %s724_s11 }
  0x25   : > { %s161_s19 = sshll.u32 %s160_s17, 4 }
  0x26   : > { %162 = vsyncadd %s1096_s20, %s161_s19  ;;  %p1099_p5 = scmp.ne.s32.totalorder %s724_s11, 0  ;;  %s748_s28 = smul.u32 40, %s984_s15 }
  0x27   : > { %s1104_s29 = sshll.u32 %s153_s27, 4  ;;  %s634_s30 = sshll.u32 %s1281_s10, 7  ;;  %s171_s29 = int_to_ptr.vmem [resolvable:$true] %s1104_s29 }
  0x28   : > { %s166_s6 = scalar_lea.hbm %s1259_s0, %s748_s28  ;;  %s866_s9 = sshrl.u32 %s634_s30, 4 }
  0x29   : > { %s168_s7 = sshll.u32 %s166_s6, 4  ;;  %s875_s27 = scalar_lea.hbm %s1259_s0, 72  ;;  %s1111_s7 = int_to_ptr.hbm [resolvable:$true] %s168_s7 }
  0x2a   : > { %s864_s8 = sshra.s32 %s1111_s7, 4  ;;  %s865_s8 = int_to_ptr.hbm [resolvable:$true] %s864_s8 }
  0x2b   : > { %s871_s11 = scalar_lea.hbm %s865_s8, %s866_s9  ;;  %p876_p10 = scmp.lt.s32.totalorder %s865_s8, %s1259_s0 }
  0x2c   : > { %p872_p7 = scmp.ne.s32.totalorder %s865_s8, %s871_s11  ;;  %p877_p1 = scmp.lt.s32.totalorder %s875_s27, %s871_s11 }
  0x2e   : > { %p873_p8 = pnand %p872_p7, %p1099_p5  ;;  %p878_p0 = por %p877_p1, %p876_p10 }
  0x30   : > { %p874_p9 = pneg %p873_p8 }
  0x32   : > { %p879_p3 = pnand %p878_p0, %p874_p9 }
  0x34   : > { %882 = shalt.err (!%p879_p3)
}
  0x35   : > { %s883_s5 = sshra.s32 %s171_s29, 4  ;;  %s989_s17 = smov [#allocation2]   ;;  %s884_s5 = int_to_ptr.vmem [resolvable:$true] %s883_s5 }
  0x36   : > { %s890_s6 = scalar_lea.vmem %s884_s5, %s866_s9  ;;  %s894_s19 = scalar_lea.vmem %s989_s17, 80 }
  0x37   : > { %p891_p7 = scmp.ne.s32.totalorder %s884_s5, %s890_s6  ;;  %p896_p4 = scmp.lt.s32.totalorder %s894_s19, %s890_s6 }
  0x39   : > { %p892_p8 = pnand %p891_p7, %p1099_p5 }
  0x3b   : > { %p893_p2 = pneg %p892_p8 }
  0x3d   : > { %p898_p12 = pnand %p896_p4, %p893_p2 }
  0x3f   : > { %901 = shalt.err (!%p898_p12)
}
  0x40   : > { %s990_s8 = smov 128   ;;  %s991_s11 = smov 8  }
  0x41   : > { %176 = dma.hbm_to_vmem [thread:$0]  (%p1099_p5), %s1111_s7, %s634_s30, %s171_s29, %s1096_s20, %s990_s8, %s990_s8, %s991_s11  }
  0x42 PF: > { %182 = sbr.rel (%p1075_p13) target bundleno = 431 (0x1af), region = 32  ;;  %s1139_s9 = sand.u32 (!%p1075_p13), 1, %s976_s13  }
  0x43   : > { %s766_s27 = smul.u32 (!%p1075_p13), 40, %s1139_s9  ;;  %s185_s4 = scalar_lea.sflag (!%p1075_p13), [#allocation3], %s1139_s9 }
  0x45   : > { %s1145_s28 = scalar_lea.vmem (!%p1075_p13), [#allocation2], %s766_s27 }
  0x47   : > { %959 = dma.done.wait (%p1060_p6), %s185_s4, 640  }
  0x48   : > { %961 = vsyncadd (%p1060_p6), %s185_s4, 4294966656  ;;  %p1271_p4 = scmp.eq.s32.totalorder %s1036_s16, 0 }
  0x4a   : > { %963 = dma.done.wait (%p1271_p4), [#allocation6], 2048   ;;  %p1272_p12 = pmov %p1271_p4 }
  0x4b   : > { %v738_v0 = vld [vmem:[#allocation5 + $0x38] sm:$0xff]  ;;  %v737_v2 = vld [vmem:[#allocation5 + $0x30] sm:$0xff]  ;;  %v736_v4 = vld [vmem:[#allocation5 + $0x28] sm:$0xff]  ;;  %s1185_s10 = scalar_lea.vmem [#allocation7], %s766_s27  ;;  %s519_s20 = scalar_lea.sflag [#allocation4], %s1139_s9 }
  0x4c   : > { %965 = vsyncadd (%p1272_p12), [#allocation6], 4294965248  ;;  %v746_v1 = vld [vmem:[#allocation5 + $0x78] sm:$0xff]  ;;  %392 = vmatpush.bf16.msra.mxu0 %v738_v0  ;;  %749 = vmatpush.bf16.msra.mxu2 %v738_v0  ;;  %v745_v3 = vld [vmem:[#allocation5 + $0x70] sm:$0xff]  ;;  %s526_s22 = smul.u32 (%p1067_p11), 5, %s1036_s16 }
  0x4d   : > { %757 = vmatpush.bf16.msra.mxu3 %v746_v1  ;;  %415 = vmatpush.bf16.msra.mxu1 %v746_v1  ;;  %v744_v5 = vld [vmem:[#allocation5 + $0x68] sm:$0xff]  ;;  %v735_v6 = vld [vmem:[#allocation5 + $0x20] sm:$0xff]  ;;  %v734_v8 = vld [vmem:[#allocation5 + $0x18] sm:$0xff] }
  0x4e   : > { %v743_v7 = vld [vmem:[#allocation5 + $0x60] sm:$0xff]  ;;  %v742_v9 = vld [vmem:[#allocation5 + $0x58] sm:$0xff]  ;;  %v733_v10 = vld [vmem:[#allocation5 + $0x10] sm:$0xff]  ;;  %s527_s29 = ssub.s32 (%p1067_p11), 9, %s526_s22 }
  0x4f   : > { %v741_v11 = vld [vmem:[#allocation5 + $0x50] sm:$0xff]  ;;  %v732_v12 = vld [vmem:[#allocation5 + $0x8] sm:$0xff]  ;;  %v731_v14 = vld [vmem:[#allocation5] sm:$0xff]  ;;  %p528_p6 = scmp.lt.s32.totalorder (%p1067_p11), %s527_s29, 5 }
  0x50   : > { %393 = vmatpush.bf16.msra.mxu0 %v737_v2  ;;  %750 = vmatpush.bf16.msra.mxu2 %v737_v2  ;;  %v740_v13 = vld [vmem:[#allocation5 + $0x48] sm:$0xff]  ;;  %v739_v15 = vld [vmem:[#allocation5 + $0x40] sm:$0xff]  ;;  %v639_v16 = vld [vmem:[%s1145_s28] sm:$0xf] }
  0x51   : > { %758 = vmatpush.bf16.msra.mxu3 %v745_v3  ;;  %416 = vmatpush.bf16.msra.mxu1 %v745_v3  ;;  %v728_v17 = vld [vmem:[%s1145_s28 + $0x4] sm:$0xf0]  ;;  %v647_v18 = vld [vmem:[%s1145_s28 + $0x10] sm:$0xf]  ;;  %v730_v19 = vld [vmem:[%s1145_s28 + $0x14] sm:$0xf0] }
  0x52   : > { %v729_v20 = vld [vmem:[%s1145_s28 + $0x14] sm:$0xf]  ;;  %v649_v21 = vld [vmem:[%s1145_s28 + $0x18] sm:$0xf0]  ;;  %v727_v22 = vld [vmem:[%s1145_s28 + $0x4] sm:$0xf]  ;;  %v640_v24 = vor.u32 %v728_v17, %v639_v16  ;;  %v648_v25 = vor.u32 %v730_v19, %v647_v18 }
  0x53   : > { %v641_v23 = vld [vmem:[%s1145_s28 + $0x8] sm:$0xf0]  ;;  %v652_v26 = vor.u32 %v729_v20, %v649_v21  ;;  %v232_v28 = vld [vmem:[%s1145_s28 + $0x20] sm:$0xff] }
  0x54   : > { %394 = vmatpush.bf16.msra.mxu0 %v736_v4  ;;  %751 = vmatpush.bf16.msra.mxu2 %v736_v4  ;;  %v644_v27 = vor.u32 %v727_v22, %v641_v23  ;;  %v282_v29 = vunpack.c.l.b16 %v232_v28  ;;  %v283_v30 = vunpack.c.h.b16 %v232_v28  ;;  %v823_v33 = vld [vmem:[%s1261_s2] ss:$0 sm:$0xff] }
  0x55   : > { %759 = vmatpush.bf16.msra.mxu3 %v744_v5  ;;  %417 = vmatpush.bf16.msra.mxu1 %v744_v5 }
  0x56   : > { %v288_v31 = vpack.c.b16 %v282_v29, %v282_v29  ;;  %v289_v32 = vpack.c.b16 %v283_v30, %v283_v30 }
  0x58   : > { %395 = vmatpush.bf16.msra.mxu0 %v735_v6  ;;  %752 = vmatpush.bf16.msra.mxu2 %v735_v6 }
  0x59   : > { %760 = vmatpush.bf16.msra.mxu3 %v743_v7  ;;  %418 = vmatpush.bf16.msra.mxu1 %v743_v7 }
  0x5c   : > { %396 = vmatpush.bf16.msra.mxu0 %v734_v8  ;;  %753 = vmatpush.bf16.msra.mxu2 %v734_v8 }
  0x5d   : > { %761 = vmatpush.bf16.msra.mxu3 %v742_v9  ;;  %419 = vmatpush.bf16.msra.mxu1 %v742_v9 }
  0x60   : > { %397 = vmatpush.bf16.msra.mxu0 %v733_v10  ;;  %754 = vmatpush.bf16.msra.mxu2 %v733_v10 }
  0x61   : > { %762 = vmatpush.bf16.msra.mxu3 %v741_v11  ;;  %420 = vmatpush.bf16.msra.mxu1 %v741_v11 }
  0x64   : > { %398 = vmatpush.bf16.msra.mxu0 %v732_v12  ;;  %755 = vmatpush.bf16.msra.mxu2 %v732_v12 }
  0x65   : > { %763 = vmatpush.bf16.msra.mxu3 %v740_v13  ;;  %421 = vmatpush.bf16.msra.mxu1 %v740_v13 }
  0x68   : > { %399 = vmatpush.bf16.msra.mxu0 %v731_v14  ;;  %756 = vmatpush.bf16.msra.mxu2 %v731_v14 }
  0x69   : > { %764 = vmatpush.bf16.msra.mxu3 %v739_v15  ;;  %422 = vmatpush.bf16.msra.mxu1 %v739_v15 }
  0x6b   : > { %400 = vmatmul.bf16.vlgmr.msra.gmra.mxu0 %v640_v24  ;;  %405 = vmatmul.bf16.vlgmr.msra.gmra.mxu2 %v648_v25 }
  0x6c   : > { %428 = vmatmul.bf16.vlgmr.msra.gmra.mxu3 %v652_v26  ;;  %423 = vmatmul.bf16.vlgmr.msra.gmra.mxu1 %v644_v27 }
  0x7b   : > { %410 = vmatmul.bf16.gmra.mxu2 %v288_v31 }
  0x7c   : > { %433 = vmatmul.bf16.gmra.mxu3 %v289_v32 }
  0xe8   : > { %v401_v34 = vpop.f32.mrf.mxu0 }
  0xe9   : > { %v402_v35 = vadd.f32 %v823_v33, %v401_v34  ;;  %v424_v36 = vpop.f32.mrf.mxu1 }
  0xeb   : > { %v425_v37 = vadd.f32 %v424_v36, %v402_v35 }
  0xed   : > { %v438_v38 = vmul.f32 %v425_v37, %v425_v37 }
  0xee   : > { %v406_v39 = vpop.f32.mrf.mxu2 }
  0xef   : > { %v407_v40 = vadd.f32 %v823_v33, %v406_v39  ;;  %v429_v41 = vpop.f32.mrf.mxu3  ;;  %443 = vadd.xlane.f32.xlu0 %v438_v38 }
  0xf0   : > { %v403_v42 = vpop.f32.mrf.mxu0 }
  0xf1   : > { %v1167_v43 = vadd.f32 %v429_v41, %v407_v40  ;;  %v404_v44 = vadd.f32 %v823_v33, %v403_v42  ;;  %v426_v45 = vpop.f32.mrf.mxu1 }
  0xf3   : > { %v1169_v46 = vadd.f32 %v426_v45, %v404_v44  ;;  %v440_v47 = vmul.f32 %v1167_v43, %v1167_v43 }
  0xf5   : > { %447 = vadd.xlane.f32.xlu1 %v440_v47  ;;  %v439_v48 = vmul.f32 %v1169_v46, %v1169_v46 }
  0xf6   : > { %v408_v49 = vpop.f32.mrf.mxu2 }
  0xf7   : > { %v409_v50 = vadd.f32 %v823_v33, %v408_v49  ;;  %v431_v51 = vpop.f32.mrf.mxu3  ;;  %445 = vadd.xlane.f32.xlu0 %v439_v48 }
  0xf9   : > { %v1175_v52 = vadd.f32 %v431_v51, %v409_v50 }
  0xfb   : > { %v441_v53 = vmul.f32 %v1175_v52, %v1175_v52 }
  0xfd   : > { %449 = vadd.xlane.f32.xlu1 %v441_v53 }
  0xfe   : > { %v411_v54 = vpop.f32.mrf.mxu2 }
  0xff   : > { %v412_v55 = vadd.f32 %v823_v33, %v411_v54  ;;  %v434_v56 = vpop.f32.mrf.mxu3 }
 0x101   : > { %v1179_v57 = vadd.f32 %v434_v56, %v412_v55 }
 0x103   : > { %v442_v58 = vmul.f32 %v1179_v57, %v1179_v57 }
 0x105   : > { %451 = vadd.xlane.f32.xlu2 %v442_v58 }
 0x106   : > { %v413_v59 = vpop.f32.mrf.mxu2 }
 0x107   : > { %v436_v60 = vpop.f32.mrf.mxu3 }
 0x162   : > { %v444_v61 = vpop.xlane.xlu0 %443 }
 0x163   : > { %v453_v62 = vadd.f32 1e-16, %v444_v61 }
 0x165   : > { %824 = vrsqrt.f32 %v453_v62  ;;  %vm464_vm0 = vweird.f32 %v453_v62 }
 0x168   : > { %v448_v63 = vpop.xlane.xlu1 %447 }
 0x169   : > { %v455_v0 = vadd.f32 1e-16, %v448_v63 }
 0x16a   : > { %v446_v1 = vpop.xlane.xlu0 %445 }
 0x16b   : > { %v825_v2 = vpop.eup %824  ;;  %826 = vrsqrt.f32 %v455_v0  ;;  %v454_v3 = vadd.f32 1e-16, %v446_v1  ;;  %vm484_vm4 = vweird.f32 %v455_v0 }
 0x16c   : > { %v459_v4 = vmul.f32 %v825_v2, %v453_v62  ;;  %vm465_vm1 = vweird.f32 %v825_v2 }
 0x16d   : > { %828 = vrsqrt.f32 %v454_v3  ;;  %vm466_vm2 = vmor %vm464_vm0, %vm465_vm1  ;;  %vm474_vm5 = vweird.f32 %v454_v3 }
 0x16e   : > { %v460_v5 = vmul.f32 %v825_v2, %v459_v4 }
 0x170   : > { %v461_v6 = vmul.f32 0.5, %v460_v5  ;;  %v450_v7 = vpop.xlane.xlu1 %449 }
 0x171   : > { %v827_v8 = vpop.eup %826  ;;  %v456_v9 = vadd.f32 1e-16, %v450_v7 }
 0x172   : > { %v462_v10 = vsub.f32 1.5, %v461_v6  ;;  %v479_v11 = vmul.f32 %v827_v8, %v455_v0  ;;  %vm485_vm3 = vweird.f32 %v827_v8 }
 0x173   : > { %v829_v12 = vpop.eup %828  ;;  %830 = vrsqrt.f32 %v456_v9  ;;  %vm486_vm7 = vmor %vm484_vm4, %vm485_vm3  ;;  %vm494_vm10 = vweird.f32 %v456_v9 }
 0x174   : > { %v463_v13 = vmul.f32 %v825_v2, %v462_v10  ;;  %v480_v14 = vmul.f32 %v827_v8, %v479_v11  ;;  %v469_v15 = vmul.f32 %v829_v12, %v454_v3  ;;  %vm475_vm6 = vweird.f32 %v829_v12 }
 0x175   : > { %vm476_vm8 = vmor %vm474_vm5, %vm475_vm6 }
 0x176   : > { %v467_v16 = vsel %vm466_vm2, %v825_v2, %v463_v13  ;;  %v481_v17 = vmul.f32 0.5, %v480_v14  ;;  %v470_v18 = vmul.f32 %v829_v12, %v469_v15 }
 0x177   : > { %v508_v19 = vmul.f32 %v467_v16, %v425_v37 }
 0x178   : > { %v482_v20 = vsub.f32 1.5, %v481_v17  ;;  %v471_v21 = vmul.f32 0.5, %v470_v18  ;;  %v452_v22 = vpop.xlane.xlu2 %451 }
 0x179   : > { %v831_v23 = vpop.eup %830  ;;  %513 = vst [vmem:[%s1185_s10] sm:$0xff] %v508_v19  ;;  %v457_v24 = vadd.f32 1e-16, %v452_v22 }
 0x17a   : > { %v483_v25 = vmul.f32 %v827_v8, %v482_v20  ;;  %v472_v26 = vsub.f32 1.5, %v471_v21  ;;  %v489_v27 = vmul.f32 %v831_v23, %v456_v9  ;;  %vm495_vm9 = vweird.f32 %v831_v23 }
 0x17b   : > { %832 = vrsqrt.f32 %v457_v24  ;;  %vm496_vm11 = vmor %vm494_vm10, %vm495_vm9  ;;  %vm504_vm13 = vweird.f32 %v457_v24 }
 0x17c   : > { %v487_v28 = vsel %vm486_vm7, %v827_v8, %v483_v25  ;;  %v473_v29 = vmul.f32 %v829_v12, %v472_v26  ;;  %v490_v30 = vmul.f32 %v831_v23, %v489_v27 }
 0x17d   : > { %v510_v31 = vmul.f32 %v487_v28, %v1167_v43 }
 0x17e   : > { %v477_v32 = vsel %vm476_vm8, %v829_v12, %v473_v29  ;;  %v491_v33 = vmul.f32 0.5, %v490_v30 }
 0x17f   : > { %515 = vst [vmem:[%s1185_s10 + $0x10] sm:$0xff] %v510_v31  ;;  %v509_v34 = vmul.f32 %v477_v32, %v1169_v46 }
 0x180   : > { %v492_v35 = vsub.f32 1.5, %v491_v33 }
 0x181   : > { %v833_v36 = vpop.eup %832  ;;  %514 = vst [vmem:[%s1185_s10 + $0x8] sm:$0xff] %v509_v34 }
 0x182   : > { %v493_v37 = vmul.f32 %v831_v23, %v492_v35  ;;  %v499_v38 = vmul.f32 %v833_v36, %v457_v24  ;;  %vm505_vm12 = vweird.f32 %v833_v36 }
 0x183   : > { %vm506_vm14 = vmor %vm504_vm13, %vm505_vm12 }
 0x184   : > { %v497_v39 = vsel %vm496_vm11, %v831_v23, %v493_v37  ;;  %v500_v40 = vmul.f32 %v833_v36, %v499_v38 }
 0x185   : > { %v511_v41 = vmul.f32 %v497_v39, %v1175_v52 }
 0x186   : > { %v501_v42 = vmul.f32 0.5, %v500_v40 }
 0x187   : > { %516 = vst [vmem:[%s1185_s10 + $0x18] sm:$0xff] %v511_v41 }
 0x188   : > { %v502_v43 = vsub.f32 1.5, %v501_v42 }
 0x18a   : > { %v503_v44 = vmul.f32 %v833_v36, %v502_v43 }
 0x18b   : > { %525 = sbr.rel (!%p1067_p11) target bundleno = 431 (0x1af), region = 44 }
 0x18c   : > { %v507_v45 = vsel %vm506_vm14, %v833_v36, %v503_v44 }
 0x18d   : > { %v512_v46 = vmul.f32 %v507_v45, %v1179_v57 }
 0x18f   : > { %517 = vst [vmem:[%s1185_s10 + $0x20] sm:$0xff] %v512_v46 }
 0x190   : > { %s1283_s29 = smov (!%p528_p6, %s527_s29), 5 }
 0x191   : > { %s717_s30 = sshll.u32 %s1283_s29, 3 }
 0x192   : > { %s531_s7 = ssub.s32 40, %s717_s30 }
 0x193   : > { %s532_s5 = sshll.u32 %s531_s7, 4 }
 0x194   : > { %533 = vsyncadd %s519_s20, %s532_s5  ;;  %p1205_p13 = scmp.ne.s32.totalorder %s717_s30, 0  ;;  %s747_s6 = smul.u32 40, %s1036_s16 }
 0x195   : > { %s538_s17 = sshll.u32 %s1185_s10, 4  ;;  %s721_s19 = sshll.u32 %s1283_s29, 7  ;;  %s1215_s17 = int_to_ptr.vmem [resolvable:$true] %s538_s17 }
 0x196   : > { %s536_s27 = scalar_lea.hbm %s1262_s3, %s747_s6  ;;  %s903_s28 = sshra.s32 %s1215_s17, 4  ;;  %s904_s28 = int_to_ptr.vmem [resolvable:$true] %s903_s28 }
 0x197   : > { %s540_s4 = sshll.u32 %s536_s27, 4  ;;  %s905_s23 = sshrl.u32 %s721_s19, 4  ;;  %s1217_s4 = int_to_ptr.hbm [resolvable:$true] %s540_s4 }
 0x198   : > { %s910_s26 = scalar_lea.vmem %s904_s28, %s905_s23  ;;  %s992_s16 = smov [#allocation7]  }
 0x199   : > { %p911_p11 = scmp.ne.s32.totalorder %s904_s28, %s910_s26  ;;  %s914_s10 = scalar_lea.vmem %s992_s16, 80 }
 0x19a   : > { %p916_p9 = scmp.lt.s32.totalorder %s914_s10, %s910_s26 }
 0x19b   : > { %p912_p2 = pnand %p911_p11, %p1205_p13 }
 0x19d   : > { %p913_p5 = pneg %p912_p2 }
 0x19f   : > { %p918_p10 = pnand %p916_p9, %p913_p5 }
 0x1a1   : > { %921 = shalt.err (!%p918_p10)
}
 0x1a2   : > { %s922_s22 = sshra.s32 %s1217_s4, 4  ;;  %s933_s6 = scalar_lea.hbm %s1262_s3, 72  ;;  %s923_s22 = int_to_ptr.hbm [resolvable:$true] %s922_s22 }
 0x1a3   : > { %s929_s30 = scalar_lea.hbm %s923_s22, %s905_s23  ;;  %p934_p7 = scmp.lt.s32.totalorder %s923_s22, %s1262_s3 }
 0x1a4   : > { %p930_p1 = scmp.ne.s32.totalorder %s923_s22, %s929_s30  ;;  %p935_p8 = scmp.lt.s32.totalorder %s933_s6, %s929_s30 }
 0x1a6   : > { %p931_p0 = pnand %p930_p1, %p1205_p13  ;;  %p936_p4 = por %p935_p8, %p934_p7 }
 0x1a8   : > { %p932_p3 = pneg %p931_p0 }
 0x1aa   : > { %p937_p12 = pnand %p936_p4, %p932_p3 }
 0x1ac   : > { %940 = shalt.err (!%p937_p12)
}
 0x1ad   : > { %s993_s27 = smov 128   ;;  %s994_s28 = smov 8  }
 0x1ae   : > { %546 = dma.vmem_to_hbm [thread:$0]  (%p1205_p13), %s1215_s17, %s721_s19, %s1217_s4, %s519_s20, %s993_s27, %s993_s27, %s994_s28  }
 0x1af PF: > { %s555_s23 = sand.u32 1, %s972_s12   ;;  %p1274_p6 = scmp.ne.s32.totalorder %s1268_s25, 0 }
 0x1b0   : > { %p1275_p11 = scmp.ge.s32.totalorder %s984_s15, 2  ;;  %s556_s26 = scalar_lea.sflag [#allocation4], %s555_s23 }
 0x1b2   : > { %p778_p2 = pnand %p1275_p11, %p1274_p6 }
 0x1b4   : > { %p779_p5 = pneg %p778_p2 }
 0x1b6   : > { %967 = dma.done.wait (%p779_p5), %s556_s26, 640  }
 0x1b7   : > { %969 = vsyncadd (%p779_p5), %s556_s26, 4294966656  ;;  %p17_p9 = scmp.ge.s32.totalorder %s1040_s18, 4   ;;  %s1276_s12 = smov %s976_s13 }
 0x1b8   : > { %s1277_s13 = smov %s980_s14  ;;  %s1278_s14 = smov %s1052_s21 }
 0x1b9   : > { %s1279_s15 = smov %s1040_s18  ;;  %19 = sbr.rel (!%p17_p9) target bundleno = 6 (0x6), region = 81 }
 0x1be   :  { %562 = vsyncpa [#allocation3], 1 }
 0x1bf   :  { %564 = vsyncpa [#allocation3 + $0x1], 1 }
 0x1c0   :  { %565 = vsyncpa [#allocation6], 1 }
 0x1c1   :  { %566 = vsyncpa [#allocation4], 1 }
 0x1c2   :  { %568 = vsyncpa [#allocation4 + $0x1], 1 }

// kernel: tpu_custom_call.1
= control target key start
LH: loop header
LB: loop body
LE: loop exit
PB: predicated region body
PF: predicated region fallthrough
CT: control target
= control target key end

     0   :  { %8 = vsyncpa [#allocation3], 0  ;;  %s1259_s0 = inlined_call_operand.hbm [shape: bf16[72,256], index: 0, kind: input, shape index: {}]   ;;  %s1260_s1 = inlined_call_operand.hbm [shape: bf16[256,128], index: 1, kind: input, shape index: {}]   ;;  %s1261_s2 = inlined_call_operand.vmem [shape: f32[1,128], index: 2, kind: input, shape index: {}]   ;;  %s1262_s3 = inlined_call_operand.hbm [shape: f32[72,128], index: 3, kind: output, shape index: {}]  }
   0x1   :  { %10 = vsyncpa [#allocation3 + $0x1], 0 }
   0x2   :  { %11 = vsyncpa [#allocation6], 0 }
   0x3   :  { %12 = vsyncpa [#allocation4], 0 }
   0x4   :  { %14 = vsyncpa [#allocation4 + $0x1], 0  ;;  %s1015_s12 = smov 0   ;;  %s1017_s13 = smov 0  }
   0x5   :  { %s1019_s14 = smov 0   ;;  %s1021_s15 = smov 0  }
   0x6 LB: > { %s1036_s16 = sadd.s32 4294967295, %s984_s15   ;;  %s624_s17 = sadd.s32 4294967294, %s984_s15   ;;  %s984_s15 = sphi %s1021_s15, %s1279_s15   ;;  %s980_s14 = sphi %s1019_s14, %s1278_s14   ;;  %s976_s13 = sphi %s1017_s13, %s1277_s13   ;;  %s972_s12 = sphi %s1015_s12, %s1276_s12  }
   0x7   : > { %s1040_s18 = sadd.s32 1, %s984_s15   ;;  %s27_s19 = sadd.s32 1, %s980_s14 }
   0x8   : > { %s24_s20 = ssub.s32 %s984_s15, %s1040_s18  ;;  %p34_p0 = scmp.ne.s32.totalorder %s980_s14, %s976_s13 }
   0x9   : > { %p25_p1 = scmp.eq.s32.totalorder %s24_s20, 0  ;;  %p35_p2 = scmp.eq.s32.totalorder %s984_s15, 0 }
   0xa   : > { %p40_p3 = scmp.ne.s32.totalorder %s976_s13, %s972_s12  ;;  %p1264_p4 = scmp.eq.s32.totalorder %s1036_s16, 0 }
   0xb   : > { %s1052_s21 = scalar_select %p25_p1, %s980_s14, %s27_s19  }
   0xc   : > { %p1054_p5 = por %p35_p2, %p34_p0  ;;  %p1060_p6 = por %p1264_p4, %p40_p3 }
   0xd   : > { %p106_p7 = scmp.eq.s32.totalorder %s1036_s16, 1  ;;  %p112_p8 = scmp.eq.s32.totalorder %s624_s17, 1 }
   0xe   : > { %p625_p9 = scmp.ge.s32.totalorder %s984_s15, 1  ;;  %p119_p10 = scmp.lt.s32.totalorder %s984_s15, 3 }
   0xf   : > { %p1067_p11 = por %p106_p7, %p34_p0  ;;  %p1071_p12 = por %p112_p8, %p40_p3 }
  0x10   : > { %p1075_p13 = pnand %p625_p9, %p119_p10  ;;  %s130_s29 = sshll.u32 %s1260_s1, 4  ;;  %s131_s29 = int_to_ptr.hbm [resolvable:$true] %s130_s29 }
  0x11   : > { %s1268_s25 = scalar_select %p1071_p12, 1, 0 }
  0x12   : > { %p773_p1 = pneg %p1075_p13  ;;  %s986_s30 = smov [#allocation5]  }
  0x13   : > { %s132_s4 = sshll.u32 %s986_s30, 4  ;;  %s987_s5 = smov 64   ;;  %s133_s4 = int_to_ptr.vmem [resolvable:$true] %s132_s4 }
  0x14   : > { %p774_p0 = pnand %p773_p1, %p1264_p4  ;;  %s988_s6 = smov 4  }
  0x15   : > { %p1263_p2 = scmp.ge.s32.totalorder %s984_s15, 2 }
  0x16   : > { %776 = dma.hbm_to_vmem [thread:$0]  (!%p774_p0), %s131_s29, 2048, %s133_s4, [#allocation6], %s987_s5, %s987_s5, %s988_s6  }
  0x17   : > { %145 = sbr.rel (%p1263_p2) target bundleno = 66 (0x42), region = 24 }
  0x1c   : > { %148 = sbr.rel (!%p1054_p5) target bundleno = 66 (0x42), region = 28  ;;  %s149_s7 = sand.u32 (%p1054_p5), 1, %s980_s14  }
  0x1d   : > { %s154_s8 = smul.u32 (%p1054_p5), 5, %s984_s15  ;;  %s1096_s20 = scalar_lea.sflag (%p1054_p5), [#allocation3], %s149_s7 }
  0x1e   : > { %s765_s9 = smul.u32 (%p1054_p5), 40, %s149_s7 }
  0x1f   : > { %s155_s10 = ssub.s32 (%p1054_p5), 9, %s154_s8 }
  0x20   : > { %p156_p3 = scmp.lt.s32.totalorder (%p1054_p5), %s155_s10, 5  ;;  %s153_s27 = scalar_lea.vmem (%p1054_p5), [#allocation2], %s765_s9 }
  0x22   : > { %s1281_s10 = smov (!%p156_p3, %s155_s10), 5 }
  0x23   : > { %s724_s11 = sshll.u32 %s1281_s10, 3 }
  0x24   : > { %s160_s17 = ssub.s32 40, %s724_s11 }
  0x25   : > { %s161_s19 = sshll.u32 %s160_s17, 4 }
  0x26   : > { %162 = vsyncadd %s1096_s20, %s161_s19  ;;  %p1099_p5 = scmp.ne.s32.totalorder %s724_s11, 0  ;;  %s748_s28 = smul.u32 40, %s984_s15 }
  0x27   : > { %s1104_s29 = sshll.u32 %s153_s27, 4  ;;  %s634_s30 = sshll.u32 %s1281_s10, 7  ;;  %s171_s29 = int_to_ptr.vmem [resolvable:$true] %s1104_s29 }
  0x28   : > { %s166_s6 = scalar_lea.hbm %s1259_s0, %s748_s28  ;;  %s866_s9 = sshrl.u32 %s634_s30, 4 }
  0x29   : > { %s168_s7 = sshll.u32 %s166_s6, 4  ;;  %s875_s27 = scalar_lea.hbm %s1259_s0, 72  ;;  %s1111_s7 = int_to_ptr.hbm [resolvable:$true] %s168_s7 }
  0x2a   : > { %s864_s8 = sshra.s32 %s1111_s7, 4  ;;  %s865_s8 = int_to_ptr.hbm [resolvable:$true] %s864_s8 }
  0x2b   : > { %s871_s11 = scalar_lea.hbm %s865_s8, %s866_s9  ;;  %p876_p10 = scmp.lt.s32.totalorder %s865_s8, %s1259_s0 }
  0x2c   : > { %p872_p7 = scmp.ne.s32.totalorder %s865_s8, %s871_s11  ;;  %p877_p1 = scmp.lt.s32.totalorder %s875_s27, %s871_s11 }
  0x2e   : > { %p873_p8 = pnand %p872_p7, %p1099_p5  ;;  %p878_p0 = por %p877_p1, %p876_p10 }
  0x30   : > { %p874_p9 = pneg %p873_p8 }
  0x32   : > { %p879_p3 = pnand %p878_p0, %p874_p9 }
  0x34   : > { %882 = shalt.err (!%p879_p3)
}
  0x35   : > { %s883_s5 = sshra.s32 %s171_s29, 4  ;;  %s989_s17 = smov [#allocation2]   ;;  %s884_s5 = int_to_ptr.vmem [resolvable:$true] %s883_s5 }
  0x36   : > { %s890_s6 = scalar_lea.vmem %s884_s5, %s866_s9  ;;  %s894_s19 = scalar_lea.vmem %s989_s17, 80 }
  0x37   : > { %p891_p7 = scmp.ne.s32.totalorder %s884_s5, %s890_s6  ;;  %p896_p4 = scmp.lt.s32.totalorder %s894_s19, %s890_s6 }
  0x39   : > { %p892_p8 = pnand %p891_p7, %p1099_p5 }
  0x3b   : > { %p893_p2 = pneg %p892_p8 }
  0x3d   : > { %p898_p12 = pnand %p896_p4, %p893_p2 }
  0x3f   : > { %901 = shalt.err (!%p898_p12)
}
  0x40   : > { %s990_s8 = smov 128   ;;  %s991_s11 = smov 8  }
  0x41   : > { %176 = dma.hbm_to_vmem [thread:$0]  (%p1099_p5), %s1111_s7, %s634_s30, %s171_s29, %s1096_s20, %s990_s8, %s990_s8, %s991_s11  }
  0x42 PF: > { %182 = sbr.rel (%p1075_p13) target bundleno = 431 (0x1af), region = 32  ;;  %s1139_s9 = sand.u32 (!%p1075_p13), 1, %s976_s13  }
  0x43   : > { %s766_s27 = smul.u32 (!%p1075_p13), 40, %s1139_s9  ;;  %s185_s4 = scalar_lea.sflag (!%p1075_p13), [#allocation3], %s1139_s9 }
  0x45   : > { %s1145_s28 = scalar_lea.vmem (!%p1075_p13), [#allocation2], %s766_s27 }
  0x47   : > { %959 = dma.done.wait (%p1060_p6), %s185_s4, 640  }
  0x48   : > { %961 = vsyncadd (%p1060_p6), %s185_s4, 4294966656  ;;  %p1271_p4 = scmp.eq.s32.totalorder %s1036_s16, 0 }
  0x4a   : > { %963 = dma.done.wait (%p1271_p4), [#allocation6], 2048   ;;  %p1272_p12 = pmov %p1271_p4 }
  0x4b   : > { %v738_v0 = vld [vmem:[#allocation5 + $0x38] sm:$0xff]  ;;  %v737_v2 = vld [vmem:[#allocation5 + $0x30] sm:$0xff]  ;;  %v736_v4 = vld [vmem:[#allocation5 + $0x28] sm:$0xff]  ;;  %s1185_s10 = scalar_lea.vmem [#allocation7], %s766_s27  ;;  %s519_s20 = scalar_lea.sflag [#allocation4], %s1139_s9 }
  0x4c   : > { %965 = vsyncadd (%p1272_p12), [#allocation6], 4294965248  ;;  %v746_v1 = vld [vmem:[#allocation5 + $0x78] sm:$0xff]  ;;  %392 = vmatpush.bf16.msra.mxu0 %v738_v0  ;;  %749 = vmatpush.bf16.msra.mxu2 %v738_v0  ;;  %v745_v3 = vld [vmem:[#allocation5 + $0x70] sm:$0xff]  ;;  %s526_s22 = smul.u32 (%p1067_p11), 5, %s1036_s16 }
  0x4d   : > { %757 = vmatpush.bf16.msra.mxu3 %v746_v1  ;;  %415 = vmatpush.bf16.msra.mxu1 %v746_v1  ;;  %v744_v5 = vld [vmem:[#allocation5 + $0x68] sm:$0xff]  ;;  %v735_v6 = vld [vmem:[#allocation5 + $0x20] sm:$0xff]  ;;  %v734_v8 = vld [vmem:[#allocation5 + $0x18] sm:$0xff] }
  0x4e   : > { %v743_v7 = vld [vmem:[#allocation5 + $0x60] sm:$0xff]  ;;  %v742_v9 = vld [vmem:[#allocation5 + $0x58] sm:$0xff]  ;;  %v733_v10 = vld [vmem:[#allocation5 + $0x10] sm:$0xff]  ;;  %s527_s29 = ssub.s32 (%p1067_p11), 9, %s526_s22 }
  0x4f   : > { %v741_v11 = vld [vmem:[#allocation5 + $0x50] sm:$0xff]  ;;  %v732_v12 = vld [vmem:[#allocation5 + $0x8] sm:$0xff]  ;;  %v731_v14 = vld [vmem:[#allocation5] sm:$0xff]  ;;  %p528_p6 = scmp.lt.s32.totalorder (%p1067_p11), %s527_s29, 5 }
  0x50   : > { %393 = vmatpush.bf16.msra.mxu0 %v737_v2  ;;  %750 = vmatpush.bf16.msra.mxu2 %v737_v2  ;;  %v740_v13 = vld [vmem:[#allocation5 + $0x48] sm:$0xff]  ;;  %v739_v15 = vld [vmem:[#allocation5 + $0x40] sm:$0xff]  ;;  %v639_v16 = vld [vmem:[%s1145_s28] sm:$0xf] }
  0x51   : > { %758 = vmatpush.bf16.msra.mxu3 %v745_v3  ;;  %416 = vmatpush.bf16.msra.mxu1 %v745_v3  ;;  %v728_v17 = vld [vmem:[%s1145_s28 + $0x4] sm:$0xf0]  ;;  %v647_v18 = vld [vmem:[%s1145_s28 + $0x10] sm:$0xf]  ;;  %v730_v19 = vld [vmem:[%s1145_s28 + $0x14] sm:$0xf0] }
  0x52   : > { %v729_v20 = vld [vmem:[%s1145_s28 + $0x14] sm:$0xf]  ;;  %v649_v21 = vld [vmem:[%s1145_s28 + $0x18] sm:$0xf0]  ;;  %v727_v22 = vld [vmem:[%s1145_s28 + $0x4] sm:$0xf]  ;;  %v640_v24 = vor.u32 %v728_v17, %v639_v16  ;;  %v648_v25 = vor.u32 %v730_v19, %v647_v18 }
  0x53   : > { %v641_v23 = vld [vmem:[%s1145_s28 + $0x8] sm:$0xf0]  ;;  %v652_v26 = vor.u32 %v729_v20, %v649_v21  ;;  %v232_v28 = vld [vmem:[%s1145_s28 + $0x20] sm:$0xff] }
  0x54   : > { %394 = vmatpush.bf16.msra.mxu0 %v736_v4  ;;  %751 = vmatpush.bf16.msra.mxu2 %v736_v4  ;;  %v644_v27 = vor.u32 %v727_v22, %v641_v23  ;;  %v282_v29 = vunpack.c.l.b16 %v232_v28  ;;  %v283_v30 = vunpack.c.h.b16 %v232_v28  ;;  %v823_v33 = vld [vmem:[%s1261_s2] ss:$0 sm:$0xff] }
  0x55   : > { %759 = vmatpush.bf16.msra.mxu3 %v744_v5  ;;  %417 = vmatpush.bf16.msra.mxu1 %v744_v5 }
  0x56   : > { %v288_v31 = vpack.c.b16 %v282_v29, %v282_v29  ;;  %v289_v32 = vpack.c.b16 %v283_v30, %v283_v30 }
  0x58   : > { %395 = vmatpush.bf16.msra.mxu0 %v735_v6  ;;  %752 = vmatpush.bf16.msra.mxu2 %v735_v6 }
  0x59   : > { %760 = vmatpush.bf16.msra.mxu3 %v743_v7  ;;  %418 = vmatpush.bf16.msra.mxu1 %v743_v7 }
  0x5c   : > { %396 = vmatpush.bf16.msra.mxu0 %v734_v8  ;;  %753 = vmatpush.bf16.msra.mxu2 %v734_v8 }
  0x5d   : > { %761 = vmatpush.bf16.msra.mxu3 %v742_v9  ;;  %419 = vmatpush.bf16.msra.mxu1 %v742_v9 }
  0x60   : > { %397 = vmatpush.bf16.msra.mxu0 %v733_v10  ;;  %754 = vmatpush.bf16.msra.mxu2 %v733_v10 }
  0x61   : > { %762 = vmatpush.bf16.msra.mxu3 %v741_v11  ;;  %420 = vmatpush.bf16.msra.mxu1 %v741_v11 }
  0x64   : > { %398 = vmatpush.bf16.msra.mxu0 %v732_v12  ;;  %755 = vmatpush.bf16.msra.mxu2 %v732_v12 }
  0x65   : > { %763 = vmatpush.bf16.msra.mxu3 %v740_v13  ;;  %421 = vmatpush.bf16.msra.mxu1 %v740_v13 }
  0x68   : > { %399 = vmatpush.bf16.msra.mxu0 %v731_v14  ;;  %756 = vmatpush.bf16.msra.mxu2 %v731_v14 }
  0x69   : > { %764 = vmatpush.bf16.msra.mxu3 %v739_v15  ;;  %422 = vmatpush.bf16.msra.mxu1 %v739_v15 }
  0x6b   : > { %400 = vmatmul.bf16.vlgmr.msra.gmra.mxu0 %v640_v24  ;;  %405 = vmatmul.bf16.vlgmr.msra.gmra.mxu2 %v648_v25 }
  0x6c   : > { %428 = vmatmul.bf16.vlgmr.msra.gmra.mxu3 %v652_v26  ;;  %423 = vmatmul.bf16.vlgmr.msra.gmra.mxu1 %v644_v27 }
  0x7b   : > { %410 = vmatmul.bf16.gmra.mxu2 %v288_v31 }
  0x7c   : > { %433 = vmatmul.bf16.gmra.mxu3 %v289_v32 }
  0xe8   : > { %v401_v34 = vpop.f32.mrf.mxu0 }
  0xe9   : > { %v402_v35 = vadd.f32 %v823_v33, %v401_v34  ;;  %v424_v36 = vpop.f32.mrf.mxu1 }
  0xeb   : > { %v425_v37 = vadd.f32 %v424_v36, %v402_v35 }
  0xed   : > { %v438_v38 = vmul.f32 %v425_v37, %v425_v37 }
  0xee   : > { %v406_v39 = vpop.f32.mrf.mxu2 }
  0xef   : > { %v407_v40 = vadd.f32 %v823_v33, %v406_v39  ;;  %v429_v41 = vpop.f32.mrf.mxu3  ;;  %443 = vadd.xlane.f32.xlu0 %v438_v38 }
  0xf0   : > { %v403_v42 = vpop.f32.mrf.mxu0 }
  0xf1   : > { %v1167_v43 = vadd.f32 %v429_v41, %v407_v40  ;;  %v404_v44 = vadd.f32 %v823_v33, %v403_v42  ;;  %v426_v45 = vpop.f32.mrf.mxu1 }
  0xf3   : > { %v1169_v46 = vadd.f32 %v426_v45, %v404_v44  ;;  %v440_v47 = vmul.f32 %v1167_v43, %v1167_v43 }
  0xf5   : > { %447 = vadd.xlane.f32.xlu1 %v440_v47  ;;  %v439_v48 = vmul.f32 %v1169_v46, %v1169_v46 }
  0xf6   : > { %v408_v49 = vpop.f32.mrf.mxu2 }
  0xf7   : > { %v409_v50 = vadd.f32 %v823_v33, %v408_v49  ;;  %v431_v51 = vpop.f32.mrf.mxu3  ;;  %445 = vadd.xlane.f32.xlu0 %v439_v48 }
  0xf9   : > { %v1175_v52 = vadd.f32 %v431_v51, %v409_v50 }
  0xfb   : > { %v441_v53 = vmul.f32 %v1175_v52, %v1175_v52 }
  0xfd   : > { %449 = vadd.xlane.f32.xlu1 %v441_v53 }
  0xfe   : > { %v411_v54 = vpop.f32.mrf.mxu2 }
  0xff   : > { %v412_v55 = vadd.f32 %v823_v33, %v411_v54  ;;  %v434_v56 = vpop.f32.mrf.mxu3 }
 0x101   : > { %v1179_v57 = vadd.f32 %v434_v56, %v412_v55 }
 0x103   : > { %v442_v58 = vmul.f32 %v1179_v57, %v1179_v57 }
 0x105   : > { %451 = vadd.xlane.f32.xlu2 %v442_v58 }
 0x106   : > { %v413_v59 = vpop.f32.mrf.mxu2 }
 0x107   : > { %v436_v60 = vpop.f32.mrf.mxu3 }
 0x162   : > { %v444_v61 = vpop.xlane.xlu0 %443 }
 0x163   : > { %v453_v62 = vadd.f32 1e-16, %v444_v61 }
 0x165   : > { %824 = vrsqrt.f32 %v453_v62  ;;  %vm464_vm0 = vweird.f32 %v453_v62 }
 0x168   : > { %v448_v63 = vpop.xlane.xlu1 %447 }
 0x169   : > { %v455_v0 = vadd.f32 1e-16, %v448_v63 }
 0x16a   : > { %v446_v1 = vpop.xlane.xlu0 %445 }
 0x16b   : > { %v825_v2 = vpop.eup %824  ;;  %826 = vrsqrt.f32 %v455_v0  ;;  %v454_v3 = vadd.f32 1e-16, %v446_v1  ;;  %vm484_vm4 = vweird.f32 %v455_v0 }
 0x16c   : > { %v459_v4 = vmul.f32 %v825_v2, %v453_v62  ;;  %vm465_vm1 = vweird.f32 %v825_v2 }
 0x16d   : > { %828 = vrsqrt.f32 %v454_v3  ;;  %vm466_vm2 = vmor %vm464_vm0, %vm465_vm1  ;;  %vm474_vm5 = vweird.f32 %v454_v3 }
 0x16e   : > { %v460_v5 = vmul.f32 %v825_v2, %v459_v4 }
 0x170   : > { %v461_v6 = vmul.f32 0.5, %v460_v5  ;;  %v450_v7 = vpop.xlane.xlu1 %449 }
 0x171   : > { %v827_v8 = vpop.eup %826  ;;  %v456_v9 = vadd.f32 1e-16, %v450_v7 }
 0x172   : > { %v462_v10 = vsub.f32 1.5, %v461_v6  ;;  %v479_v11 = vmul.f32 %v827_v8, %v455_v0  ;;  %vm485_vm3 = vweird.f32 %v827_v8 }
 0x173   : > { %v829_v12 = vpop.eup %828  ;;  %830 = vrsqrt.f32 %v456_v9  ;;  %vm486_vm7 = vmor %vm484_vm4, %vm485_vm3  ;;  %vm494_vm10 = vweird.f32 %v456_v9 }
 0x174   : > { %v463_v13 = vmul.f32 %v825_v2, %v462_v10  ;;  %v480_v14 = vmul.f32 %v827_v8, %v479_v11  ;;  %v469_v15 = vmul.f32 %v829_v12, %v454_v3  ;;  %vm475_vm6 = vweird.f32 %v829_v12 }
 0x175   : > { %vm476_vm8 = vmor %vm474_vm5, %vm475_vm6 }
 0x176   : > { %v467_v16 = vsel %vm466_vm2, %v825_v2, %v463_v13  ;;  %v481_v17 = vmul.f32 0.5, %v480_v14  ;;  %v470_v18 = vmul.f32 %v829_v12, %v469_v15 }
 0x177   : > { %v508_v19 = vmul.f32 %v467_v16, %v425_v37 }
 0x178   : > { %v482_v20 = vsub.f32 1.5, %v481_v17  ;;  %v471_v21 = vmul.f32 0.5, %v470_v18  ;;  %v452_v22 = vpop.xlane.xlu2 %451 }
 0x179   : > { %v831_v23 = vpop.eup %830  ;;  %513 = vst [vmem:[%s1185_s10] sm:$0xff] %v508_v19  ;;  %v457_v24 = vadd.f32 1e-16, %v452_v22 }
 0x17a   : > { %v483_v25 = vmul.f32 %v827_v8, %v482_v20  ;;  %v472_v26 = vsub.f32 1.5, %v471_v21  ;;  %v489_v27 = vmul.f32 %v831_v23, %v456_v9  ;;  %vm495_vm9 = vweird.f32 %v831_v23 }
 0x17b   : > { %832 = vrsqrt.f32 %v457_v24  ;;  %vm496_vm11 = vmor %vm494_vm10, %vm495_vm9  ;;  %vm504_vm13 = vweird.f32 %v457_v24 }
 0x17c   : > { %v487_v28 = vsel %vm486_vm7, %v827_v8, %v483_v25  ;;  %v473_v29 = vmul.f32 %v829_v12, %v472_v26  ;;  %v490_v30 = vmul.f32 %v831_v23, %v489_v27 }
 0x17d   : > { %v510_v31 = vmul.f32 %v487_v28, %v1167_v43 }
 0x17e   : > { %v477_v32 = vsel %vm476_vm8, %v829_v12, %v473_v29  ;;  %v491_v33 = vmul.f32 0.5, %v490_v30 }
 0x17f   : > { %515 = vst [vmem:[%s1185_s10 + $0x10] sm:$0xff] %v510_v31  ;;  %v509_v34 = vmul.f32 %v477_v32, %v1169_v46 }
 0x180   : > { %v492_v35 = vsub.f32 1.5, %v491_v33 }
 0x181   : > { %v833_v36 = vpop.eup %832  ;;  %514 = vst [vmem:[%s1185_s10 + $0x8] sm:$0xff] %v509_v34 }
 0x182   : > { %v493_v37 = vmul.f32 %v831_v23, %v492_v35  ;;  %v499_v38 = vmul.f32 %v833_v36, %v457_v24  ;;  %vm505_vm12 = vweird.f32 %v833_v36 }
 0x183   : > { %vm506_vm14 = vmor %vm504_vm13, %vm505_vm12 }
 0x184   : > { %v497_v39 = vsel %vm496_vm11, %v831_v23, %v493_v37  ;;  %v500_v40 = vmul.f32 %v833_v36, %v499_v38 }
 0x185   : > { %v511_v41 = vmul.f32 %v497_v39, %v1175_v52 }
 0x186   : > { %v501_v42 = vmul.f32 0.5, %v500_v40 }
 0x187   : > { %516 = vst [vmem:[%s1185_s10 + $0x18] sm:$0xff] %v511_v41 }
 0x188   : > { %v502_v43 = vsub.f32 1.5, %v501_v42 }
 0x18a   : > { %v503_v44 = vmul.f32 %v833_v36, %v502_v43 }
 0x18b   : > { %525 = sbr.rel (!%p1067_p11) target bundleno = 431 (0x1af), region = 44 }
 0x18c   : > { %v507_v45 = vsel %vm506_vm14, %v833_v36, %v503_v44 }
 0x18d   : > { %v512_v46 = vmul.f32 %v507_v45, %v1179_v57 }
 0x18f   : > { %517 = vst [vmem:[%s1185_s10 + $0x20] sm:$0xff] %v512_v46 }
 0x190   : > { %s1283_s29 = smov (!%p528_p6, %s527_s29), 5 }
 0x191   : > { %s717_s30 = sshll.u32 %s1283_s29, 3 }
 0x192   : > { %s531_s7 = ssub.s32 40, %s717_s30 }
 0x193   : > { %s532_s5 = sshll.u32 %s531_s7, 4 }
 0x194   : > { %533 = vsyncadd %s519_s20, %s532_s5  ;;  %p1205_p13 = scmp.ne.s32.totalorder %s717_s30, 0  ;;  %s747_s6 = smul.u32 40, %s1036_s16 }
 0x195   : > { %s538_s17 = sshll.u32 %s1185_s10, 4  ;;  %s721_s19 = sshll.u32 %s1283_s29, 7  ;;  %s1215_s17 = int_to_ptr.vmem [resolvable:$true] %s538_s17 }
 0x196   : > { %s536_s27 = scalar_lea.hbm %s1262_s3, %s747_s6  ;;  %s903_s28 = sshra.s32 %s1215_s17, 4  ;;  %s904_s28 = int_to_ptr.vmem [resolvable:$true] %s903_s28 }
 0x197   : > { %s540_s4 = sshll.u32 %s536_s27, 4  ;;  %s905_s23 = sshrl.u32 %s721_s19, 4  ;;  %s1217_s4 = int_to_ptr.hbm [resolvable:$true] %s540_s4 }
 0x198   : > { %s910_s26 = scalar_lea.vmem %s904_s28, %s905_s23  ;;  %s992_s16 = smov [#allocation7]  }
 0x199   : > { %p911_p11 = scmp.ne.s32.totalorder %s904_s28, %s910_s26  ;;  %s914_s10 = scalar_lea.vmem %s992_s16, 80 }
 0x19a   : > { %p916_p9 = scmp.lt.s32.totalorder %s914_s10, %s910_s26 }
 0x19b   : > { %p912_p2 = pnand %p911_p11, %p1205_p13 }
 0x19d   : > { %p913_p5 = pneg %p912_p2 }
 0x19f   : > { %p918_p10 = pnand %p916_p9, %p913_p5 }
 0x1a1   : > { %921 = shalt.err (!%p918_p10)
}
 0x1a2   : > { %s922_s22 = sshra.s32 %s1217_s4, 4  ;;  %s933_s6 = scalar_lea.hbm %s1262_s3, 72  ;;  %s923_s22 = int_to_ptr.hbm [resolvable:$true] %s922_s22 }
 0x1a3   : > { %s929_s30 = scalar_lea.hbm %s923_s22, %s905_s23  ;;  %p934_p7 = scmp.lt.s32.totalorder %s923_s22, %s1262_s3 }
 0x1a4   : > { %p930_p1 = scmp.ne.s32.totalorder %s923_s22, %s929_s30  ;;  %p935_p8 = scmp.lt.s32.totalorder %s933_s6, %s929_s30 }
 0x1a6   : > { %p931_p0 = pnand %p930_p1, %p1205_p13  ;;  %p936_p4 = por %p935_p8, %p934_p7 }
 0x1a8   : > { %p932_p3 = pneg %p931_p0 }
 0x1aa   : > { %p937_p12 = pnand %p936_p4, %p932_p3 }
 0x1ac   : > { %940 = shalt.err (!%p937_p12)
}
 0x1ad   : > { %s993_s27 = smov 128   ;;  %s994_s28 = smov 8  }
 0x1ae   : > { %546 = dma.vmem_to_hbm [thread:$0]  (%p1205_p13), %s1215_s17, %s721_s19, %s1217_s4, %s519_s20, %s993_s27, %s993_s27, %s994_s28  }
 0x1af PF: > { %s555_s23 = sand.u32 1, %s972_s12   ;;  %p1274_p6 = scmp.ne.s32.totalorder %s1268_s25, 0 }
 0x1b0   : > { %p1275_p11 = scmp.ge.s32.totalorder %s984_s15, 2  ;;  %s556_s26 = scalar_lea.sflag [#allocation4], %s555_s23 }
 0x1b2   : > { %p778_p2 = pnand %p1275_p11, %p1274_p6 }
 0x1b4   : > { %p779_p5 = pneg %p778_p2 }
 0x1b6   : > { %967 = dma.done.wait (%p779_p5), %s556_s26, 640  }
 0x1b7   : > { %969 = vsyncadd (%p779_p5), %s556_s26, 4294966656  ;;  %p17_p9 = scmp.ge.s32.totalorder %s1040_s18, 4   ;;  %s1276_s12 = smov %s976_s13 }
 0x1b8   : > { %s1277_s13 = smov %s980_s14  ;;  %s1278_s14 = smov %s1052_s21 }
 0x1b9   : > { %s1279_s15 = smov %s1040_s18  ;;  %19 = sbr.rel (!%p17_p9) target bundleno = 6 (0x6), region = 81 }
 0x1be   :  { %562 = vsyncpa [#allocation3], 1 }
 0x1bf   :  { %564 = vsyncpa [#allocation3 + $0x1], 1 }
 0x1c0   :  { %565 = vsyncpa [#allocation6], 1 }
 0x1c1   :  { %566 = vsyncpa [#allocation4], 1 }
 0x1c2   :  { %568 = vsyncpa [#allocation4 + $0x1], 1 }

</bundles_post_ra>
